<compile_context>
chip_gen: v7x
topology: tpu7x:2x2x1
jax: 0.10.0
libtpu: 0.0.40
codegen_flags: <defaults>
</compile_context>

<pallas_src>
import jax
import jax.numpy as jnp
from jax.experimental import pallas as pl
from jax.experimental.pallas import tpu as pltpu

_HI = jax.lax.Precision.HIGHEST


# --------------------------------------------------------------------------
# helpers
# --------------------------------------------------------------------------
def _round_up(n, m):
    return ((n + m - 1) // m) * m


def _pad_to(x, shape):
    return jnp.pad(x, [(0, s - d) for s, d in zip(shape, x.shape)])


def build_gcn_adjacency(edge_index, num_nodes):
    """Dense D^-1/2 (A + I) D^-1/2, matching torch_geometric GCNConv's gcn_norm."""
    self_loops = jnp.arange(num_nodes, dtype=edge_index.dtype)
    src = jnp.concatenate([edge_index[0], self_loops])
    dst = jnp.concatenate([edge_index[1], self_loops])
    ones = jnp.ones(src.shape[0], jnp.float32)
    deg = jnp.zeros((num_nodes,), jnp.float32).at[dst].add(ones)
    dinv = jnp.where(deg > 0.0, 1.0 / jnp.sqrt(jnp.maximum(deg, 1e-12)), 0.0)
    norm = dinv[src] * dinv[dst]
    return jnp.zeros((num_nodes, num_nodes), jnp.float32).at[dst, src].add(norm)


# --------------------------------------------------------------------------
# Kernel 1a: XW = X @ W_comb   (W_comb already folds W_gcn^T @ [w_s | w_t])
# --------------------------------------------------------------------------
def _gcn_xw_kernel(x_ref, w_ref, out_ref):
    out_ref[...] = jnp.dot(x_ref[...], w_ref[...], preferred_element_type=jnp.float32)


def gcn_xw_forward(x_p, w_comb):
    n_p, d_p = x_p.shape
    lanes = w_comb.shape[1]
    return pl.pallas_call(
        _gcn_xw_kernel,
        out_shape=jax.ShapeDtypeStruct((n_p, lanes), jnp.float32),
        grid_spec=pltpu.PrefetchScalarGridSpec(
            num_scalar_prefetch=0,
            grid=(1,),
            in_specs=[
                pl.BlockSpec((n_p, d_p), lambda i: (0, 0)),
                pl.BlockSpec((d_p, lanes), lambda i: (0, 0)),
            ],
            out_specs=pl.BlockSpec((n_p, lanes), lambda i: (0, 0)),
        ),
        compiler_params=pltpu.CompilerParams(dimension_semantics=("arbitrary",)),
    )(x_p, w_comb)


# --------------------------------------------------------------------------
# Kernel 1b: node_st = A_norm @ XW + b_comb   (row-tiled, "parallel")
# --------------------------------------------------------------------------
def _gcn_agg_kernel(a_ref, xw_ref, b_ref, out_ref):
    out_ref[...] = (
        jnp.dot(a_ref[...], xw_ref[...], preferred_element_type=jnp.float32)
        + b_ref[...]
    )


def gcn_aggregate_forward(a_norm, xw, b_comb, *, tn):
    n_p = a_norm.shape[0]
    lanes = xw.shape[1]
    return pl.pallas_call(
        _gcn_agg_kernel,
        out_shape=jax.ShapeDtypeStruct((n_p, lanes), jnp.float32),
        grid_spec=pltpu.PrefetchScalarGridSpec(
            num_scalar_prefetch=0,
            grid=(n_p // tn,),
            in_specs=[
                pl.BlockSpec((tn, n_p), lambda i: (i, 0)),
                pl.BlockSpec((n_p, lanes), lambda i: (0, 0)),
                pl.BlockSpec((1, lanes), lambda i: (0, 0)),
            ],
            out_specs=pl.BlockSpec((tn, lanes), lambda i: (i, 0)),
        ),
        compiler_params=pltpu.CompilerParams(dimension_semantics=("parallel",)),
    )(a_norm, xw, b_comb)


# --------------------------------------------------------------------------
# Kernel 2: fused stacked LSTM + edge predictor.
#   Layers are interleaved per timestep (carries only), stacked [x;h] matmul,
#   sigmoid via tanh, only the final score (tb, 1) is written per tile.
# --------------------------------------------------------------------------
def _make_fused_lstm_pred_kernel(num_layers, t_steps, h_p, tb):
    def kernel(*refs):
        seq_ref, node_ref, wl_ref = refs[0], refs[1], refs[2]
        w_refs = [refs[3 + 2 * l] for l in range(num_layers)]
        b_refs = [refs[4 + 2 * l] for l in range(num_layers)]
        out_ref = refs[3 + 2 * num_layers]

        ws = [r[...] for r in w_refs]                                  # (K_l, 4*h_p)
        # bias broadcast hoisted out of the (unrolled) time loop
        bs = [jnp.broadcast_to(r[...], (tb, 4 * h_p)) for r in b_refs]

        def sigmoid(z):                       # 1 EUP tanh + 1 FMA (no exp + divide)
            return 0.5 * jnp.tanh(0.5 * z) + 0.5

        def cell(x_t, h, c, w, b):
            xh = jnp.concatenate([x_t, h], axis=-1)                    # (tb, K_l)
            gates = jnp.dot(xh, w, preferred_element_type=jnp.float32) + b
            i_g = sigmoid(gates[:, 0 * h_p:1 * h_p])
            f_g = sigmoid(gates[:, 1 * h_p:2 * h_p])
            g_g = jnp.tanh(gates[:, 2 * h_p:3 * h_p])
            o_g = sigmoid(gates[:, 3 * h_p:4 * h_p])
            c_new = f_g * c + i_g * g_g
            h_new = o_g * jnp.tanh(c_new)
            return h_new, c_new

        def step(t, carry):
            x = seq_ref[t]                                             # (tb, Din_p)
            new_carry = []
            for l in range(num_layers):
                h, c = carry[2 * l], carry[2 * l + 1]
                h, c = cell(x, h, c, ws[l], bs[l])
                new_carry.extend([h, c])
                x = h
            return tuple(new_carry)

        zeros = jnp.zeros((tb, h_p), jnp.float32)
        carry = jax.lax.fori_loop(
            0, t_steps, step, tuple(zeros for _ in range(2 * num_layers)),
            unroll=True)
        h_last = carry[2 * (num_layers - 1)]                           # (tb, h_p)

        # fused edge predictor: lstm term + (node_s[sender]+node_t[receiver]+b)
        score = jnp.sum(h_last * wl_ref[...], axis=-1, keepdims=True)  # (tb, 1)
        out_ref[...] = score + node_ref[...]

    return kernel


def fused_lstm_predictor_forward(seq, node_col, wl_row, layer_ws, layer_bs, *, tb, h_p):
    t_steps, e_p, d_in_p = seq.shape
    num_layers = len(layer_ws)
    kernel = _make_fused_lstm_pred_kernel(num_layers, t_steps, h_p, tb)

    in_specs = [
        pl.BlockSpec((t_steps, tb, d_in_p), lambda i: (0, i, 0)),
        pl.BlockSpec((tb, 1), lambda i: (i, 0)),
        pl.BlockSpec((1, h_p), lambda i: (0, 0)),
    ]
    operands = [seq, node_col, wl_row]
    for w, b in zip(layer_ws, layer_bs):
        in_specs.append(pl.BlockSpec(w.shape, lambda i: (0, 0)))
        in_specs.append(pl.BlockSpec(b.shape, lambda i: (0, 0)))
        operands.extend([w, b])

    return pl.pallas_call(
        kernel,
        out_shape=jax.ShapeDtypeStruct((e_p, 1), jnp.float32),
        grid_spec=pltpu.PrefetchScalarGridSpec(
            num_scalar_prefetch=0,
            grid=(e_p // tb,),
            in_specs=in_specs,
            out_specs=pl.BlockSpec((tb, 1), lambda i: (i, 0)),
        ),
        compiler_params=pltpu.CompilerParams(dimension_semantics=("parallel",)),
    )(*operands)


# --------------------------------------------------------------------------
# parameter packing (PyTorch layouts -> padded, stacked kernel layouts)
# --------------------------------------------------------------------------
def _pack_lstm_layer(w_ih, w_hh, b_ih, b_hh, d_in_pad, h_pad):
    """PyTorch w_ih (4H, Din), w_hh (4H, H) -> stacked ([W_ih ; W_hh], transposed)
    of shape (d_in_pad + h_pad, 4*h_pad); gate blocks [i|f|g|o] padded to h_pad."""
    four_h, d_in = w_ih.shape
    h = four_h // 4
    w_ih_p = jnp.pad(
        w_ih.T.reshape(d_in, 4, h),
        ((0, d_in_pad - d_in), (0, 0), (0, h_pad - h)),
    ).reshape(d_in_pad, 4 * h_pad)
    w_hh_p = jnp.pad(
        w_hh.T.reshape(h, 4, h),
        ((0, h_pad - h), (0, 0), (0, h_pad - h)),
    ).reshape(h_pad, 4 * h_pad)
    w_stacked = jnp.concatenate([w_ih_p, w_hh_p], axis=0)
    b_p = jnp.pad(
        (b_ih + b_hh).reshape(4, h), ((0, 0), (0, h_pad - h))
    ).reshape(1, 4 * h_pad)
    return w_stacked, b_p


# --------------------------------------------------------------------------
# full forward (mirrors TemporalGraphModelGCNBatch.forward)
# --------------------------------------------------------------------------
def temporal_graph_forward(params, sender, receiver, edge_features, edge_index, num_nodes):
    emb = params["emb"]            # (N, D)        nn.Embedding weight
    gcn_w = params["gcn_w"]        # (Hg, D)       GCNConv linear weight (PyTorch layout)
    gcn_b = params["gcn_b"]        # (Hg,)
    lstm_params = params["lstm"]   # list of (w_ih, w_hh, b_ih, b_hh)
    pred_w = params["pred_w"]      # (1, 2*Hg + Hl)
    pred_b = params["pred_b"]      # (1,)

    n, d = emb.shape
    hg = gcn_w.shape[0]
    hl = lstm_params[0][1].shape[1]
    e, t, d_in = edge_features.shape

    lanes = 128
    d_p = _round_up(d, 128)
    hl_p = _round_up(hl, 128)
    d_in_p = _round_up(d_in, 128)
    n_p = _round_up(n, 128)
    tn = 256 if (n_p % 256 == 0 and n_p >= 512) else 128

    e_p0 = _round_up(e, 128)
    tb = 128 if e_p0 < 512 else 256     # keep >=2 grid steps for mid-size E (v7x)
    e_p = _round_up(e, tb)

    # ---- fold the edge_predictor's gcn columns into the GCN weights -------
    w_s = pred_w[0, :hg]
    w_t = pred_w[0, hg:2 * hg]
    w_l = pred_w[0, 2 * hg:]
    w_comb = jnp.zeros((d_p, lanes), jnp.float32)
    w_comb = w_comb.at[:d, 0].set(jnp.dot(gcn_w.T, w_s, precision=_HI))
    w_comb = w_comb.at[:d, 1].set(jnp.dot(gcn_w.T, w_t, precision=_HI))
    b_comb = jnp.zeros((1, lanes), jnp.float32)
    b_comb = b_comb.at[0, 0].set(jnp.dot(gcn_b, w_s, precision=_HI))
    b_comb = b_comb.at[0, 1].set(jnp.dot(gcn_b, w_t, precision=_HI))

    # ---- GCN (dense normalized adjacency built in the wrapper: scatter) ----
    a_norm = _pad_to(build_gcn_adjacency(edge_index, n), (n_p, n_p))
    x_p = _pad_to(emb, (n_p, d_p))
    xw = gcn_xw_forward(x_p, w_comb)                               # (n_p, 128)
    node_st = gcn_aggregate_forward(a_norm, xw, b_comb, tn=tn)     # (n_p, 128)

    # per-edge scalar node term (gather of E scalars, done in the wrapper)
    node_term = node_st[sender, 0] + node_st[receiver, 1] + pred_b[0]   # (E,)
    node_col = _pad_to(node_term[:, None], (e_p, 1))

    # ---- fused stacked LSTM + predictor ------------------------------------
    seq = _pad_to(jnp.transpose(edge_features, (1, 0, 2)), (t, e_p, d_in_p))
    layer_ws, layer_bs = [], []
    cur_in_pad = d_in_p
    for (w_ih, w_hh, b_ih, b_hh) in lstm_params:
        w_st, b_p = _pack_lstm_layer(w_ih, w_hh, b_ih, b_hh, cur_in_pad, hl_p)
        layer_ws.append(w_st)
        layer_bs.append(b_p)
        cur_in_pad = hl_p
    wl_row = jnp.zeros((1, hl_p), jnp.float32).at[0, :hl].set(w_l)

    scores = fused_lstm_predictor_forward(
        seq, node_col, wl_row, layer_ws, layer_bs, tb=tb, h_p=hl_p)     # (e_p, 1)
    return scores[:e, 0]


# --------------------------------------------------------------------------
# pure-JAX reference mirroring the PyTorch module (independent code path)
# --------------------------------------------------------------------------
def reference_forward(params, sender, receiver, edge_features, edge_index, num_nodes):
    emb = params["emb"]
    # GCNConv: add self loops, symmetric norm, x @ W^T, scatter-aggregate, + bias
    self_loops = jnp.arange(num_nodes, dtype=edge_index.dtype)
    src = jnp.concatenate([edge_index[0], self_loops])
    dst = jnp.concatenate([edge_index[1], self_loops])
    ones = jnp.ones(src.shape[0], jnp.float32)
    deg = jnp.zeros((num_nodes,), jnp.float32).at[dst].add(ones)
    dinv = jnp.where(deg > 0.0, 1.0 / jnp.sqrt(jnp.maximum(deg, 1e-12)), 0.0)
    norm = dinv[src] * dinv[dst]
    xw = jnp.dot(emb, params["gcn_w"].T, precision=_HI)
    gcn_out = jnp.zeros((num_nodes, xw.shape[1]), jnp.float32).at[dst].add(
        norm[:, None] * xw[src])
    gcn_out = gcn_out + params["gcn_b"][None, :]

    # stacked LSTM (batch_first), keep last timestep of the top layer
    seq = edge_features
    for (w_ih, w_hh, b_ih, b_hh) in params["lstm"]:
        hdim = w_hh.shape[1]
        n_batch = seq.shape[0]
        h = jnp.zeros((n_batch, hdim), jnp.float32)
        c = jnp.zeros((n_batch, hdim), jnp.float32)
        outs = []
        for ts in range(seq.shape[1]):
            g = (jnp.dot(seq[:, ts, :], w_ih.T, precision=_HI) + b_ih
                 + jnp.dot(h, w_hh.T, precision=_HI) + b_hh)
            i_g, f_g, g_g, o_g = jnp.split(g, 4, axis=1)
            i_g = jax.nn.sigmoid(i_g)
            f_g = jax.nn.sigmoid(f_g)
            g_g = jnp.tanh(g_g)
            o_g = jax.nn.sigmoid(o_g)
            c = f_g * c + i_g * g_g
            h = o_g * jnp.tanh(c)
            outs.append(h)
        seq = jnp.stack(outs, axis=1)
    lstm_last = seq[:, -1, :]

    combined = jnp.concatenate([gcn_out[sender], gcn_out[receiver], lstm_last], axis=1)
    return jnp.dot(combined, params["pred_w"][0], precision=_HI) + params["pred_b"][0]


# --------------------------------------------------------------------------
if __name__ == "__main__":
    # small deterministic example consistent with the module's forward
    num_nodes = 24        # num_nodes_global
    emb_dim = 16          # embedding_dim
    gcn_hidden = 32       # gcn_hidden_dim
    lstm_hidden = 32      # lstm_hidden_dim
    lstm_layers = 2       # lstm_layers
    edge_attr_dim = 8     # edge_attr_dim
    num_graph_edges = 40  # columns of edge_index (GCN message-passing edges)
    num_pred_edges = 16   # batch of (sender, receiver, edge_features) queries
    seq_len = 8

    key = jax.random.PRNGKey(0)
    keys = jax.random.split(key, 10)

    edge_index = jax.random.randint(keys[0], (2, num_graph_edges), 0, num_nodes,
                                    dtype=jnp.int32)
    sender = jax.random.randint(keys[1], (num_pred_edges,), 0, num_nodes, dtype=jnp.int32)
    receiver = jax.random.randint(keys[2], (num_pred_edges,), 0, num_nodes, dtype=jnp.int32)
    edge_features = jax.random.normal(
        keys[3], (num_pred_edges, seq_len, edge_attr_dim), jnp.float32)

    params = {
        "emb": jax.random.normal(keys[4], (num_nodes, emb_dim), jnp.float32),
        "gcn_w": jax.random.normal(keys[5], (gcn_hidden, emb_dim), jnp.float32) * 0.2,
        "gcn_b": jax.random.normal(keys[6], (gcn_hidden,), jnp.float32) * 0.1,
        "lstm": [],
        "pred_w": jax.random.normal(keys[7], (1, 2 * gcn_hidden + lstm_hidden),
                                    jnp.float32) * 0.1,
        "pred_b": jax.random.normal(keys[8], (1,), jnp.float32) * 0.1,
    }
    lkeys = jax.random.split(keys[9], 4 * lstm_layers)
    d_cur = edge_attr_dim
    for layer in range(lstm_layers):
        scale = 0.15
        w_ih = jax.random.normal(lkeys[4 * layer + 0], (4 * lstm_hidden, d_cur),
                                 jnp.float32) * scale
        w_hh = jax.random.normal(lkeys[4 * layer + 1], (4 * lstm_hidden, lstm_hidden),
                                 jnp.float32) * scale
        b_ih = jax.random.normal(lkeys[4 * layer + 2], (4 * lstm_hidden,),
                                 jnp.float32) * scale
        b_hh = jax.random.normal(lkeys[4 * layer + 3], (4 * lstm_hidden,),
                                 jnp.float32) * scale
        params["lstm"].append((w_ih, w_hh, b_ih, b_hh))
        d_cur = lstm_hidden

    out = temporal_graph_forward(params, sender, receiver, edge_features,
                                 edge_index, num_nodes)
    out = jax.block_until_ready(out)

    ref = reference_forward(params, sender, receiver, edge_features,
                            edge_index, num_nodes)
    ref = jax.block_until_ready(ref)

    assert out.shape == (num_pred_edges,), out.shape
    assert jnp.allclose(out, ref, atol=1e-4, rtol=1e-4), (
        out, ref, float(jnp.max(jnp.abs(out - ref))))
    print("KERNEL_OK")
</pallas_src>

<mosaic_0001>
module attributes {stable_mosaic.version = 11 : i64} {
  func.func @_gcn_xw_kernel(%arg0: i32, %arg1: memref<128x128xf32, #tpu.memory_space<vmem>>, %arg2: memref<128x128xf32, #tpu.memory_space<vmem>>, %arg3: memref<128x128xf32, #tpu.memory_space<vmem>>) attributes {dimension_semantics = [#tpu.dimension_semantics<arbitrary>], iteration_bounds = array<i64: 1>, scalar_prefetch = 0 : i64, scratch_operands = 0 : i64, tpu.core_type = #tpu.core_type<tc>, window_params = [{pipeline_mode = #tpu.pipeline_mode<synchronous>, transform_indices = @transform_0, window_bounds = array<i64: 128, 128>}, {pipeline_mode = #tpu.pipeline_mode<synchronous>, transform_indices = @transform_1, window_bounds = array<i64: 128, 128>}, {pipeline_mode = #tpu.pipeline_mode<synchronous>, transform_indices = @transform_2, window_bounds = array<i64: 128, 128>}]} {
    %c0 = arith.constant 0 : index
    %c0_0 = arith.constant 0 : index
    %0 = vector.load %arg1[%c0, %c0_0] : memref<128x128xf32, #tpu.memory_space<vmem>>, vector<128x128xf32>
    %c0_1 = arith.constant 0 : index
    %c0_2 = arith.constant 0 : index
    %1 = vector.load %arg2[%c0_1, %c0_2] : memref<128x128xf32, #tpu.memory_space<vmem>>, vector<128x128xf32>
    %cst = arith.constant dense<0.000000e+00> : vector<128x128xf32>
    %2 = tpu.matmul %0, %1, %cst {dimension_numbers = #tpu.dot_dimension_numbers<[1], [0], [0], [1], [0, 0, 1, 1], [], []>} : vector<128x128xf32>, vector<128x128xf32>, vector<128x128xf32> -> vector<128x128xf32>
    %c0_3 = arith.constant 0 : index
    %c0_4 = arith.constant 0 : index
    %3 = vector.load %arg3[%c0_3, %c0_4] : memref<128x128xf32, #tpu.memory_space<vmem>>, vector<128x128xf32>
    tpu.vector_store %arg3[%c0_3, %c0_4], %2 {strides = array<i32>} : memref<128x128xf32, #tpu.memory_space<vmem>>, vector<128x128xf32>,
    return
  }
  func.func @transform_0(%arg0: i32) -> (i32, i32) {
    %c0_i32 = arith.constant 0 : i32
    %c0_i32_0 = arith.constant 0 : i32
    %c0_i32_1 = arith.constant 0 : i32
    return %c0_i32, %c0_i32_0 : i32, i32
  }
  func.func @transform_1(%arg0: i32) -> (i32, i32) {
    %c0_i32 = arith.constant 0 : i32
    %c0_i32_0 = arith.constant 0 : i32
    %c0_i32_1 = arith.constant 0 : i32
    return %c0_i32, %c0_i32_0 : i32, i32
  }
  func.func @transform_2(%arg0: i32) -> (i32, i32) {
    %c0_i32 = arith.constant 0 : i32
    %c0_i32_0 = arith.constant 0 : i32
    %c0_i32_1 = arith.constant 0 : i32
    return %c0_i32, %c0_i32_0 : i32, i32
  }
}

</mosaic_0001>

<bundles_post_ra>
// kernel: tpu_custom_call.1
= control target key start
LH: loop header
LB: loop body
LE: loop exit
PB: predicated region body
PF: predicated region fallthrough
CT: control target
= control target key end

     0   :  { %7 = vsyncpa [#allocation3], 0  ;;  %s529_s0 = inlined_call_operand.hbm [shape: f32[128,128], index: 0, kind: input, shape index: {}]   ;;  %s530_s1 = inlined_call_operand.hbm [shape: f32[128,128], index: 1, kind: input, shape index: {}]   ;;  %s531_s2 = inlined_call_operand.hbm [shape: f32[128,128], index: 2, kind: output, shape index: {}]  }
   0x1   :  { %8 = vsyncpa [#allocation6], 0 }
   0x2   :  { %9 = vsyncpa [#allocation4], 0  ;;  %s464_s9 = smov [#allocation2]   ;;  %s392_s13 = scalar_lea.hbm %s529_s0, 2048 }
   0x3   :  { %s15_s10 = sshll.u32 %s464_s9, 4  ;;  %p393_p0 = scmp.ne.s32.totalorder %s529_s0, %s392_s13  ;;  %s16_s10 = int_to_ptr.vmem [resolvable:$true] %s15_s10 }
   0x4   :  { %p396_p1 = scmp.lt.u32.totalorder %s392_s13, %s529_s0 }
   0x6   :  { %p398_p2 = pnand %p396_p1, %p393_p0 }
   0x8   :  { %401 = shalt.err (!%p398_p2)
}
   0x9   :  { %s402_s18 = scalar_lea.vmem %s16_s10, 2048  ;;  %p407_p4 = scmp.lt.s32.totalorder %s16_s10, %s16_s10 }
   0xa   :  { %p403_p3 = scmp.ne.s32.totalorder %s16_s10, %s402_s18  ;;  %p408_p5 = scmp.lt.s32.totalorder %s402_s18, %s402_s18 }
   0xc   :  { %p409_p6 = por %p408_p5, %p407_p4 }
   0xe   :  { %p410_p7 = pnand %p409_p6, %p403_p3 }
  0x10   :  { %413 = shalt.err (!%p410_p7)
}
  0x11   :  { %s465_s19 = smov 128   ;;  %s466_s20 = smov 8  }
  0x12   :  { %21 = dma.hbm_to_vmem [thread:$0]  %s529_s0, 2048, %s16_s10, [#allocation3], %s465_s19, %s465_s19, %s466_s20  }
  0x13   :  { %s467_s23 = smov [#allocation5]   ;;  %s414_s27 = scalar_lea.hbm %s530_s1, 2048 }
  0x14   :  { %s27_s24 = sshll.u32 %s467_s23, 4  ;;  %p415_p8 = scmp.ne.s32.totalorder %s530_s1, %s414_s27  ;;  %s28_s24 = int_to_ptr.vmem [resolvable:$true] %s27_s24 }
  0x15   :  { %p418_p9 = scmp.lt.u32.totalorder %s414_s27, %s530_s1 }
  0x17   :  { %p420_p10 = pnand %p418_p9, %p415_p8 }
  0x19   :  { %423 = shalt.err (!%p420_p10)
}
  0x1a   :  { %s424_s4 = scalar_lea.vmem %s28_s24, 2048  ;;  %p429_p12 = scmp.lt.s32.totalorder %s28_s24, %s28_s24 }
  0x1b   :  { %p425_p11 = scmp.ne.s32.totalorder %s28_s24, %s424_s4  ;;  %p430_p13 = scmp.lt.s32.totalorder %s424_s4, %s424_s4 }
  0x1d   :  { %p431_p0 = por %p430_p13, %p429_p12 }
  0x1f   :  { %p432_p1 = pnand %p431_p0, %p425_p11 }
  0x21   :  { %435 = shalt.err (!%p432_p1)
}
  0x22   :  { %33 = dma.hbm_to_vmem [thread:$0]  %s530_s1, 2048, %s28_s24, [#allocation6], %s465_s19, %s465_s19, %s466_s20  }
  0x23   :  { %458 = dma.done.wait [#allocation3], 2048  }
  0x24   :  { %459 = vsyncadd [#allocation3], 4294965248 }
  0x25   :  { %460 = dma.done.wait [#allocation6], 2048  }
  0x26   :  { %461 = vsyncadd [#allocation6], 4294965248  ;;  %v56_v0 = vld [vmem:[#allocation5] sm:$0xff]  ;;  %v57_v1 = vld [vmem:[#allocation5 + $0x8] sm:$0xff]  ;;  %s468_s1 = smov [#allocation7]  }
  0x27   :  { %v58_v2 = vld [vmem:[#allocation5 + $0x10] sm:$0xff]  ;;  %v339_v3 = vpack.c.bf16 %v57_v1, %v56_v0  ;;  %v59_v4 = vld [vmem:[#allocation5 + $0x18] sm:$0xff]  ;;  %v60_v6 = vld [vmem:[#allocation5 + $0x20] sm:$0xff]  ;;  %s238_s6 = sshll.u32 %s468_s1, 4  ;;  %s239_s6 = int_to_ptr.vmem [resolvable:$true] %s238_s6 }
  0x28   :  { %v343_v5 = vpack.c.bf16 %v59_v4, %v58_v2  ;;  %v61_v7 = vld [vmem:[#allocation5 + $0x28] sm:$0xff]  ;;  %v40_v9 = vld [vmem:[#allocation2] sm:$0xff]  ;;  %v62_v11 = vld [vmem:[#allocation5 + $0x30] sm:$0xff]  ;;  %s436_s7 = scalar_lea.vmem %s239_s6, 2048  ;;  %p441_p3 = scmp.lt.s32.totalorder %s239_s6, %s239_s6 }
  0x29   :  { %340 = vmatprep.subr.bf16.mxu0 %v339_v3  ;;  %371 = vmatprep.subr.bf16.mxu1 %v339_v3  ;;  %v347_v8 = vpack.c.bf16 %v61_v7, %v60_v6  ;;  %v48_v10 = vld [vmem:[#allocation2 + $0x40] sm:$0xff]  ;;  %v63_v12 = vld [vmem:[#allocation5 + $0x38] sm:$0xff]  ;;  %v65_v15 = vld [vmem:[#allocation5 + $0x48] sm:$0xff]  ;;  %p437_p2 = scmp.ne.s32.totalorder %s239_s6, %s436_s7  ;;  %p442_p4 = scmp.lt.s32.totalorder %s436_s7, %s436_s7 }
  0x2a   :  { %342 = vmatpush3.bf16.msra.mxu0 %v339_v3  ;;  %379 = vmatpush3.bf16.msra.mxu1 %v339_v3  ;;  %v351_v13 = vpack.c.bf16 %v63_v12, %v62_v11  ;;  %v64_v14 = vld [vmem:[#allocation5 + $0x40] sm:$0xff]  ;;  %v66_v17 = vld [vmem:[#allocation5 + $0x50] sm:$0xff]  ;;  %v67_v18 = vld [vmem:[#allocation5 + $0x58] sm:$0xff] }
  0x2b   :  { %344 = vmatprep.subr.bf16.mxu0 %v343_v5  ;;  %372 = vmatprep.subr.bf16.mxu1 %v343_v5  ;;  %v355_v16 = vpack.c.bf16 %v65_v15, %v64_v14  ;;  %v359_v19 = vpack.c.bf16 %v67_v18, %v66_v17  ;;  %v68_v20 = vld [vmem:[#allocation5 + $0x60] sm:$0xff]  ;;  %v69_v21 = vld [vmem:[#allocation5 + $0x68] sm:$0xff]  ;;  %v70_v23 = vld [vmem:[#allocation5 + $0x70] sm:$0xff]  ;;  %p443_p5 = por %p442_p4, %p441_p3 }
  0x2c   :  { %315 = vmatprep.mubr.f32.mxu0 %v40_v9  ;;  %327 = vmatprep.mubr.f32.mxu1 %v48_v10  ;;  %v363_v22 = vpack.c.bf16 %v69_v21, %v68_v20  ;;  %v71_v24 = vld [vmem:[#allocation5 + $0x78] sm:$0xff]  ;;  %v41_v26 = vld [vmem:[#allocation2 + $0x8] sm:$0xff]  ;;  %v42_v28 = vld [vmem:[#allocation2 + $0x10] sm:$0xff] }
  0x2d   :  { %v367_v25 = vpack.c.bf16 %v71_v24, %v70_v23  ;;  %v49_v27 = vld [vmem:[#allocation2 + $0x48] sm:$0xff]  ;;  %v50_v29 = vld [vmem:[#allocation2 + $0x50] sm:$0xff]  ;;  %v43_v30 = vld [vmem:[#allocation2 + $0x18] sm:$0xff]  ;;  %p444_p6 = pnand %p443_p5, %p437_p2 }
  0x2e   :  { %346 = vmatpush3.bf16.msra.mxu0 %v343_v5  ;;  %380 = vmatpush3.bf16.msra.mxu1 %v343_v5  ;;  %v51_v31 = vld [vmem:[#allocation2 + $0x58] sm:$0xff]  ;;  %v44_v32 = vld [vmem:[#allocation2 + $0x20] sm:$0xff]  ;;  %v45_v34 = vld [vmem:[#allocation2 + $0x28] sm:$0xff] }
  0x2f   :  { %348 = vmatprep.subr.bf16.mxu0 %v347_v8  ;;  %373 = vmatprep.subr.bf16.mxu1 %v347_v8  ;;  %v52_v33 = vld [vmem:[#allocation2 + $0x60] sm:$0xff]  ;;  %v53_v35 = vld [vmem:[#allocation2 + $0x68] sm:$0xff]  ;;  %v46_v36 = vld [vmem:[#allocation2 + $0x30] sm:$0xff] }
  0x30   :  { %v54_v37 = vld [vmem:[#allocation2 + $0x70] sm:$0xff]  ;;  %v47_v38 = vld [vmem:[#allocation2 + $0x38] sm:$0xff] }
  0x31   :  { %v55_v39 = vld [vmem:[#allocation2 + $0x78] sm:$0xff] }
  0x32   :  { %350 = vmatpush3.bf16.msra.mxu0 %v347_v8  ;;  %381 = vmatpush3.bf16.msra.mxu1 %v347_v8 }
  0x33   :  { %352 = vmatprep.subr.bf16.mxu0 %v351_v13  ;;  %374 = vmatprep.subr.bf16.mxu1 %v351_v13 }
  0x36   :  { %354 = vmatpush3.bf16.msra.mxu0 %v351_v13  ;;  %382 = vmatpush3.bf16.msra.mxu1 %v351_v13 }
  0x37   :  { %356 = vmatprep.subr.bf16.mxu0 %v355_v16  ;;  %375 = vmatprep.subr.bf16.mxu1 %v355_v16 }
  0x3a   :  { %358 = vmatpush3.bf16.msra.mxu0 %v355_v16  ;;  %383 = vmatpush3.bf16.msra.mxu1 %v355_v16 }
  0x3b   :  { %360 = vmatprep.subr.bf16.mxu0 %v359_v19  ;;  %376 = vmatprep.subr.bf16.mxu1 %v359_v19 }
  0x3e   :  { %362 = vmatpush3.bf16.msra.mxu0 %v359_v19  ;;  %384 = vmatpush3.bf16.msra.mxu1 %v359_v19 }
  0x3f   :  { %364 = vmatprep.subr.bf16.mxu0 %v363_v22  ;;  %377 = vmatprep.subr.bf16.mxu1 %v363_v22 }
  0x42   :  { %366 = vmatpush3.bf16.msra.mxu0 %v363_v22  ;;  %385 = vmatpush3.bf16.msra.mxu1 %v363_v22 }
  0x43   :  { %368 = vmatprep.subr.bf16.mxu0 %v367_v25  ;;  %378 = vmatprep.subr.bf16.mxu1 %v367_v25 }
  0x46   :  { %370 = vmatpush3.bf16.msra.mxu0 %v367_v25  ;;  %386 = vmatpush3.bf16.msra.mxu1 %v367_v25 }
  0x49   :  { %316 = vmatmul.mubr.f32.vlgmr.msra.gmra.mrb[0].mxu0 %v41_v26  ;;  %328 = vmatmul.mubr.f32.vlgmr.msra.gmra.mrb[0].mxu1 %v49_v27 }
  0x4a   :  { %318 = vmatprep.mubr.f32.mxu0 %v42_v28  ;;  %330 = vmatprep.mubr.f32.mxu1 %v50_v29 }
  0x4d   :  { %319 = vmatmul.mubr.f32.gmra.mrb[2].mxu0 %v43_v30  ;;  %331 = vmatmul.mubr.f32.gmra.mrb[2].mxu1 %v51_v31 }
  0x4e   :  { %321 = vmatprep.mubr.f32.mxu0 %v44_v32  ;;  %333 = vmatprep.mubr.f32.mxu1 %v52_v33 }
  0x51   :  { %322 = vmatmul.mubr.f32.gmra.mrb[4].mxu0 %v45_v34  ;;  %334 = vmatmul.mubr.f32.gmra.mrb[4].mxu1 %v53_v35 }
  0x52   :  { %324 = vmatprep.mubr.f32.mxu0 %v46_v36  ;;  %336 = vmatprep.mubr.f32.mxu1 %v54_v37 }
  0x55   :  { %325 = vmatmul.mubr.f32.gmra.mrb[6].mxu0 %v47_v38  ;;  %337 = vmatmul.mubr.f32.gmra.mrb[6].mxu1 %v55_v39 }
 0x11c   :  { %v317_v40 = vpop.f32.mrb[0].mxu0  ;;  %v329_v41 = vpop.f32.mrb[0].mxu1 }
 0x11d   :  { %218 = vst [vmem:[#allocation7 + $0x8] sm:$0xff] %v317_v40  ;;  %226 = vst [vmem:[#allocation7 + $0x48] sm:$0xff] %v329_v41  ;;  %v138_v42 = vpop.f32.mrb[1].mxu0  ;;  %v178_v43 = vpop.f32.mrb[1].mxu1 }
 0x11e   :  { %217 = vst [vmem:[#allocation7] sm:$0xff] %v138_v42  ;;  %225 = vst [vmem:[#allocation7 + $0x40] sm:$0xff] %v178_v43 }
 0x120   :  { %v320_v44 = vpop.f32.mrb[2].mxu0  ;;  %v332_v45 = vpop.f32.mrb[2].mxu1 }
 0x121   :  { %220 = vst [vmem:[#allocation7 + $0x18] sm:$0xff] %v320_v44  ;;  %228 = vst [vmem:[#allocation7 + $0x58] sm:$0xff] %v332_v45  ;;  %v148_v46 = vpop.f32.mrb[3].mxu0  ;;  %v188_v47 = vpop.f32.mrb[3].mxu1 }
 0x122   :  { %219 = vst [vmem:[#allocation7 + $0x10] sm:$0xff] %v148_v46  ;;  %227 = vst [vmem:[#allocation7 + $0x50] sm:$0xff] %v188_v47 }
 0x124   :  { %v323_v48 = vpop.f32.mrb[4].mxu0  ;;  %v335_v49 = vpop.f32.mrb[4].mxu1 }
 0x125   :  { %222 = vst [vmem:[#allocation7 + $0x28] sm:$0xff] %v323_v48  ;;  %230 = vst [vmem:[#allocation7 + $0x68] sm:$0xff] %v335_v49  ;;  %v158_v50 = vpop.f32.mrb[5].mxu0  ;;  %v198_v51 = vpop.f32.mrb[5].mxu1 }
 0x126   :  { %221 = vst [vmem:[#allocation7 + $0x20] sm:$0xff] %v158_v50  ;;  %229 = vst [vmem:[#allocation7 + $0x60] sm:$0xff] %v198_v51 }
 0x128   :  { %v326_v52 = vpop.f32.mrb[6].mxu0  ;;  %v338_v53 = vpop.f32.mrb[6].mxu1 }
 0x129   :  { %224 = vst [vmem:[#allocation7 + $0x38] sm:$0xff] %v326_v52  ;;  %232 = vst [vmem:[#allocation7 + $0x78] sm:$0xff] %v338_v53  ;;  %v168_v54 = vpop.f32.mrb[7].mxu0  ;;  %v208_v55 = vpop.f32.mrb[7].mxu1 }
 0x12a   :  { %223 = vst [vmem:[#allocation7 + $0x30] sm:$0xff] %v168_v54  ;;  %231 = vst [vmem:[#allocation7 + $0x70] sm:$0xff] %v208_v55 }
 0x12b   :  { %447 = shalt.err (!%p444_p6)
}
 0x12c   :  { %s448_s10 = scalar_lea.hbm %s531_s2, 2048 }
 0x12d   :  { %p449_p7 = scmp.ne.s32.totalorder %s531_s2, %s448_s10  ;;  %p452_p8 = scmp.lt.u32.totalorder %s448_s10, %s531_s2 }
 0x12f   :  { %p454_p9 = pnand %p452_p8, %p449_p7 }
 0x131   :  { %457 = shalt.err (!%p454_p9)
}
 0x132   :  { %244 = dma.vmem_to_hbm [thread:$0]  %s239_s6, 2048, %s531_s2, [#allocation4], %s465_s19, %s465_s19, %s466_s20  }
 0x133   :  { %462 = dma.done.wait [#allocation4], 2048  }
 0x134   :  { %463 = vsyncadd [#allocation4], 4294965248 }
 0x135   :  { %248 = vsyncpa [#allocation3], 1 }
 0x136   :  { %249 = vsyncpa [#allocation6], 1 }
 0x137   :  { %250 = vsyncpa [#allocation4], 1 }

</bundles_post_ra>
